<compile_context>
chip_gen: v6e
topology: v6e:2x2x1
jax: 0.10.0
libtpu: 0.0.40
codegen_flags: <defaults>
</compile_context>

<pallas_src>
import jax
import jax.numpy as jnp
from jax.experimental import pallas as pl
from jax.experimental.pallas import tpu as pltpu

_MAX_UNROLL = 8  # static per-step unroll cap (keeps live ranges in 64 vregs)


def _patch_kernel(x_ref, o_ref):
    # x_ref: (1, C, k*P, W)      o_ref: (1, k, wP, D)   with D=C*P*P, W=wP*P
    _, C, KP, W = x_ref.shape
    _, k, wP, D = o_ref.shape
    P = KP // k
    A = C * P
    # k <= _MAX_UNROLL (see _choose_rows_per_block).  Each iteration does ONE
    # fused relayout of a strip into a lane-dense (wP, D) output row.
    for r in range(k):
        strip = x_ref[0, :, r * P:(r + 1) * P, :]          # (C, P, W) static slice
        # (C, P, W) -> (C*P, wP, P): collapse (C,P) onto the sublane axis and
        # split W into (w_patch, col); one transpose brings the patch axis to
        # the front (wP, C*P, P) = patch-major / (channel,row,col) order; the
        # final reshape flattens to the (wP, D) output row.
        row = jnp.transpose(strip.reshape(A, wP, P), (1, 0, 2)).reshape(wP, D)
        o_ref[0, r] = row


def _vmem_capacity_bytes() -> int:
    """Physical VMEM of the local TPU; falls back to the smallest (v7x)."""
    try:
        info = pltpu.get_tpu_info()
        for attr in ("vmem_capacity_bytes", "vmem_bytes", "vmem_size_bytes"):
            v = getattr(info, attr, None)
            if v:
                return int(v)
    except Exception:
        pass
    return 64 << 20


def _choose_rows_per_block(B, hP, P, C, W, wP, D, itemsize, pair_budget):
    """Patch-rows (k) processed per grid step.

    Priorities:
      * layout-legal: the input block's sublane dim k*P is a multiple of the
        dtype's sublane pack (8/16/32 for 4/2/1-byte dtypes) or the full H;
      * k <= _MAX_UNROLL and the in+out block pair fits `pair_budget`;
      * enough grid steps (B*(hP//k) >= 4 when possible) for double-buffered
        DMA overlap and for both TensorCores on v7x;
      * within that, the largest k (amortizes the ~0.35us per-step overhead).
    """
    H = hP * P
    pack = {1: 32, 2: 16}.get(itemsize, 8)

    def legal(k):
        kp = k * P
        return kp == H or kp % pack == 0

    def pair_bytes(k):
        return (C * k * P * W + k * wP * D) * itemsize

    divisors = [k for k in range(1, hP + 1) if hP % k == 0]
    legal_divs = [k for k in divisors if legal(k)] or [hP]

    target_steps = min(4, B * hP)

    cands = [k for k in legal_divs
             if k <= _MAX_UNROLL
             and pair_bytes(k) <= pair_budget
             and B * (hP // k) >= target_steps]
    if not cands:  # tiny grids: drop the pipelining-depth requirement
        cands = [k for k in legal_divs
                 if k <= _MAX_UNROLL and pair_bytes(k) <= pair_budget]
    if cands:
        return max(cands)
    return min(legal_divs)  # legality only (huge images / awkward packs)


def patch_extract(images: jax.Array, patch_size: int) -> jax.Array:
    """Pallas implementation of PatchExtractor.forward (NCHW input)."""
    B, C, H, W = images.shape
    assert H % patch_size == 0 and W % patch_size == 0, (
        f"Input height ({H}) and width ({W}) must be divisible by "
        f"patch_size ({patch_size})")
    P = patch_size
    hP, wP = H // P, W // P
    D = C * P * P
    itemsize = jnp.dtype(images.dtype).itemsize

    vmem_cap = _vmem_capacity_bytes()
    pair_budget = vmem_cap // 6   # headroom for 2x double-buffering + relayout
                                  # intermediates + Mosaic internal scratch
    k = _choose_rows_per_block(B, hP, P, C, W, wP, D, itemsize, pair_budget)
    assert hP % k == 0

    pair = (C * k * P * W + k * wP * D) * itemsize
    vmem_limit = int(max(8 << 20, min(3 * pair + (2 << 20), (vmem_cap * 3) // 4)))

    out4 = pl.pallas_call(
        _patch_kernel,
        out_shape=jax.ShapeDtypeStruct((B, hP, wP, D), images.dtype),
        grid=(B, hP // k),
        in_specs=[
            pl.BlockSpec((1, C, k * P, W), lambda b, h: (b, 0, h, 0)),
        ],
        out_specs=pl.BlockSpec((1, k, wP, D), lambda b, h: (b, h, 0, 0)),
        compiler_params=pltpu.CompilerParams(
            dimension_semantics=("parallel", "parallel"),
            vmem_limit_bytes=vmem_limit),
    )(images)

    # Free contiguous collapse (no data movement): (B, hP, wP, D) -> (B, n, D).
    return out4.reshape(B, hP * wP, D)


def _reference(images: jax.Array, patch_size: int) -> jax.Array:
    """Pure-JAX reference matching the PyTorch unfold/permute/view."""
    B, C, H, W = images.shape
    hP, wP = H // patch_size, W // patch_size
    x = images.reshape(B, C, hP, patch_size, wP, patch_size)
    x = jnp.transpose(x, (0, 2, 4, 1, 3, 5))   # (B, hP, wP, C, P, P)
    return x.reshape(B, hP * wP, C * patch_size * patch_size)


if __name__ == "__main__":
    key = jax.random.PRNGKey(0)
    k1, k2 = jax.random.split(key)

    # Case 1: batch=2, channels=4, 16x16 image, patch=8  (D=256, k=1, 4 steps).
    imgs1 = jax.random.normal(k1, (2, 4, 16, 16), dtype=jnp.float32)
    out1 = jax.block_until_ready(patch_extract(imgs1, 8))
    ref1 = _reference(imgs1, 8)
    assert out1.shape == (2, 4, 256), out1.shape
    assert jnp.array_equal(out1, ref1), "Pallas output mismatch vs reference (case 1)"

    # Case 2: exercises k>1 multi-row blocks, a multi-step grid and a
    # non-128-multiple patch dim (D=192 -> masked final stores).
    imgs2 = jax.random.normal(k2, (2, 3, 32, 32), dtype=jnp.float32)
    out2 = jax.block_until_ready(patch_extract(imgs2, 8))
    ref2 = _reference(imgs2, 8)
    assert out2.shape == (2, 16, 192), out2.shape
    assert jnp.array_equal(out2, ref2), "Pallas output mismatch vs reference (case 2)"

    print("KERNEL_OK")
</pallas_src>

<mosaic_0001>
module attributes {stable_mosaic.version = 11 : i64} {
  func.func @_patch_kernel(%arg0: i32, %arg1: i32, %arg2: memref<1x4x8x16xf32, #tpu.memory_space<vmem>>, %arg3: memref<1x1x2x256xf32, #tpu.memory_space<vmem>>) attributes {dimension_semantics = [#tpu.dimension_semantics<parallel>, #tpu.dimension_semantics<parallel>], iteration_bounds = array<i64: 2, 2>, scalar_prefetch = 0 : i64, scratch_operands = 0 : i64, tpu.core_type = #tpu.core_type<tc>, window_params = [{transform_indices = @transform_0, window_bounds = array<i64: 1, 4, 8, 16>}, {transform_indices = @transform_1, window_bounds = array<i64: 1, 1, 2, 256>}]} {
    %c0 = arith.constant 0 : index
    %c0_0 = arith.constant 0 : index
    %c0_1 = arith.constant 0 : index
    %c0_2 = arith.constant 0 : index
    %0 = vector.load %arg2[%c0, %c0_0, %c0_1, %c0_2] : memref<1x4x8x16xf32, #tpu.memory_space<vmem>>, vector<1x4x8x16xf32>
    %1 = vector.shape_cast %0 : vector<1x4x8x16xf32> to vector<4x8x16xf32>
    %2 = vector.shape_cast %1 : vector<4x8x16xf32> to vector<32x2x8xf32>
    %3 = tpu.transpose %2, [1, 0, 2] : vector<32x2x8xf32> -> vector<2x32x8xf32>
    %4 = vector.shape_cast %3 : vector<2x32x8xf32> to vector<2x256xf32>
    %c0_3 = arith.constant 0 : index
    %c0_4 = arith.constant 0 : index
    %c0_5 = arith.constant 0 : index
    %c0_6 = arith.constant 0 : index
    %5 = vector.load %arg3[%c0_3, %c0_4, %c0_5, %c0_6] : memref<1x1x2x256xf32, #tpu.memory_space<vmem>>, vector<1x1x2x256xf32>
    %6 = vector.shape_cast %5 : vector<1x1x2x256xf32> to vector<2x256xf32>
    %7 = vector.shape_cast %4 : vector<2x256xf32> to vector<1x1x2x256xf32>
    tpu.vector_store %arg3[%c0_3, %c0_4, %c0_5, %c0_6], %7 {strides = array<i32>} : memref<1x1x2x256xf32, #tpu.memory_space<vmem>>, vector<1x1x2x256xf32>,
    return
  }
  func.func @transform_0(%arg0: i32, %arg1: i32) -> (i32, i32, i32, i32) {
    %c0_i32 = arith.constant 0 : i32
    %c0_i32_0 = arith.constant 0 : i32
    %c0_i32_1 = arith.constant 0 : i32
    return %arg0, %c0_i32, %arg1, %c0_i32_0 : i32, i32, i32, i32
  }
  func.func @transform_1(%arg0: i32, %arg1: i32) -> (i32, i32, i32, i32) {
    %c0_i32 = arith.constant 0 : i32
    %c0_i32_0 = arith.constant 0 : i32
    %c0_i32_1 = arith.constant 0 : i32
    return %arg0, %arg1, %c0_i32, %c0_i32_0 : i32, i32, i32, i32
  }
}

</mosaic_0001>

<bundles_post_ra>
// kernel: tpu_custom_call.1
= control target key start
LH: loop header
LB: loop body
LE: loop exit
PB: predicated region body
PF: predicated region fallthrough
CT: control target
= control target key end

     0   :  { %6 = vsyncpa [#allocation3], 0  ;;  %s1795_s0 = inlined_call_operand.hbm [shape: f32[2,4,16,16], index: 0, kind: input, shape index: {}]   ;;  %s1796_s1 = inlined_call_operand.hbm [shape: f32[2,2,2,256], index: 1, kind: output, shape index: {}]  }
   0x1   :  { %8 = vsyncpa [#allocation3 + $0x1], 0 }
   0x2   :  { %9 = vsyncpa [#allocation4], 0 }
   0x3   :  { %11 = vsyncpa [#allocation4 + $0x1], 0  ;;  %s1467_s6 = smov 0   ;;  %s1469_s7 = smov 0  }
   0x4   :  { %s1471_s8 = smov 0   ;;  %s1473_s9 = smov 0  }
   0x5   :  { %s1475_s10 = smov 0   ;;  %s1477_s11 = smov 0  }
   0x6   :  { %s1479_s12 = smov 0   ;;  %s1481_s13 = smov 0  }
   0x7 LB: > { %s1180_s14 = sadd.s32 4294967295, %s1432_s13   ;;  %s1181_s15 = sadd.s32 4294967294, %s1432_s13   ;;  %s1432_s13 = sphi %s1481_s13, %s17_s13   ;;  %s1428_s12 = sphi %s1479_s12, %s1808_s12   ;;  %s1424_s11 = sphi %s1477_s11, %s1807_s11   ;;  %s1420_s10 = sphi %s1475_s10, %s1806_s10   ;;  %s1416_s9 = sphi %s1473_s9, %s1805_s9   ;;  %s1412_s8 = sphi %s1471_s8, %s1804_s8   ;;  %s1408_s7 = sphi %s1469_s7, %s1803_s7   ;;  %s1404_s6 = sphi %s1467_s6, %s1802_s6  }
   0x8   : > { %s26_s16 = sadd.s32 1, %s1424_s11  ;;  %s29_s17 = sadd.s32 1, %s1428_s12 }
   0x9   : > { %p27_p0 = scmp.ge.s32.totalorder %s26_s16, 2  ;;  %s38_s18 = sadd.s32 1, %s1412_s8 }
   0xa   : > { %p45_p1 = scmp.ne.s32.totalorder %s1412_s8, %s1408_s7  ;;  %p46_p2 = scmp.eq.s32.totalorder %s1432_s13, 0 }
   0xb   : > { %s1810_s16 = smov (%p27_p0, %s26_s16), 0  ;;  %s1812_s17 = smov (!%p27_p0, %s29_s17), %s1428_s12 }
   0xc   : > { %s34_s19 = ssub.s32 %s1424_s11, %s1810_s16  ;;  %p1520_p3 = por %p46_p2, %p45_p1 }
   0xd   : > { %p31_p4 = scmp.ge.s32.totalorder %s1812_s17, 2  ;;  %p51_p5 = scmp.ne.s32.totalorder %s1408_s7, %s1404_s6 }
   0xe   : > { %p52_p6 = scmp.eq.s32.totalorder %s1180_s14, 0  ;;  %p77_p7 = scmp.eq.s32.totalorder %s1180_s14, 3 }
   0xf   : > { %s1814_s17 = smov (%p31_p4, %s1812_s17), 0  ;;  %p83_p10 = scmp.eq.s32.totalorder %s1181_s15, 3 }
  0x10   : > { %p1528_p8 = por %p52_p6, %p51_p5  ;;  %p1532_p9 = por %p77_p7, %p45_p1 }
  0x11   : > { %s33_s23 = ssub.s32 %s1428_s12, %s1814_s17  ;;  %p1538_p12 = por %p83_p10, %p51_p5 }
  0x12   : > { %s35_s24 = sor.u32 %s34_s19, %s33_s23  ;;  %p1221_p13 = scmp.lt.s32.totalorder %s1432_s13, 4 }
  0x13   : > { %p36_p11 = scmp.eq.s32.totalorder %s35_s24, 0  ;;  %s103_s26 = sand.u32 1, %s1412_s8  }
  0x14   : > { %s1184_s28 = sshll.u32 %s103_s26, 5  ;;  %s1185_s29 = sshll.u32 %s1428_s12, 3 }
  0x15   : > { %s1545_s27 = scalar_select %p36_p11, %s1412_s8, %s38_s18  }
  0x16   : > { %s112_s30 = sadd.s32 %s1424_s11, %s1185_s29  ;;  %s107_s2 = scalar_lea.vmem [#allocation2], %s1184_s28 }
  0x17   : > { %s115_s3 = sshll.u32 %s107_s2, 4  ;;  %s1186_s4 = sshll.u32 %s112_s30, 7  ;;  %s116_s3 = int_to_ptr.vmem [resolvable:$true] %s115_s3 }
  0x18   : > { %s114_s15 = scalar_lea.hbm %s1795_s0, %s1186_s4  ;;  %p1554_p0 = pnand %p1221_p13, %p1520_p3 }
  0x19   : > { %s104_s23 = scalar_lea.sflag [#allocation3], %s103_s26  ;;  %s1321_s18 = scalar_lea.vmem %s116_s3, 512 }
  0x1a   : > { %p1310_p1 = pneg %p1554_p0  ;;  %p1322_p2 = scmp.ne.s32.totalorder %s116_s3, %s1321_s18 }
  0x1b   : > { %s1434_s24 = smov [#allocation2]  }
  0x1c   : > { %p1324_p4 = pnand %p1322_p2, %p1310_p1  ;;  %s1326_s28 = sshll.u32 %s1434_s24, 4  ;;  %s1327_s28 = int_to_ptr.vmem [resolvable:$false] %s1326_s28 }
  0x1d   : > { %s1328_s29 = scalar_lea.vmem %s1327_s28, 1024  ;;  %p1329_p6 = scmp.lt.s32.totalorder %s116_s3, %s1327_s28 }
  0x1e   : > { %p1325_p5 = pneg %p1324_p4  ;;  %p1330_p7 = scmp.lt.s32.totalorder %s1328_s29, %s1321_s18 }
  0x20   : > { %p1331_p10 = por %p1330_p7, %p1329_p6 }
  0x22   : > { %p1332_p11 = pnand %p1331_p10, %p1325_p5 }
  0x24   : > { %1335 = shalt.err (!%p1332_p11)
}
  0x25   : > { %s1435_s20 = smov 256   ;;  %s1436_s26 = smov 128  }
  0x26   : > { %s1437_s30 = smov 8   ;;  %p1187_p3 = scmp.ge.s32.totalorder %s1432_s13, 1 }
  0x27   : > { %1216 = dma.hbm_to_vmem [thread:$0]  (!%p1554_p0), %s114_s15, 512, %s116_s3, %s104_s23, %s1435_s20, %s1436_s26, %s1437_s30  }
  0x28   : > { %p123_p13 = scmp.lt.s32.totalorder %s1432_s13, 5 }
  0x2a   : > { %p124_p1 = pnand %p1187_p3, %p123_p13 }
  0x2b   : > { %s1565_s2 = sand.u32 (!%p124_p1), 1, %s1408_s7  }
  0x2c   : > { %127 = sbr.rel (%p124_p1) target bundleno = 387 (0x183), region = 24  ;;  %s1188_s4 = sshll.u32 (!%p124_p1), %s1565_s2, 5 }
  0x2d   : > { %s130_s5 = scalar_lea.sflag (!%p124_p1), [#allocation3], %s1565_s2  ;;  %s133_s14 = scalar_lea.vmem (!%p124_p1), [#allocation2], %s1188_s4 }
  0x31   : > { %1395 = dma.done.wait (%p1528_p8), %s130_s5, 512  }
  0x32   : > { %1397 = vsyncadd (%p1528_p8), %s130_s5, 4294966784  ;;  %v152_v0 = vld [vmem:[%s133_s14] sm:$0xff]  ;;  %v153_v1 = vld [vmem:[%s133_s14 + $0x8] sm:$0xff]  ;;  %s1438_s3 = smov 120   ;;  %v1439_v4 = vmov 1983009808   ;;  %v176_v6 = vlaneseq }
  0x33   : > { %160 = vrot.lane.b32.xlu0 %v152_v0, %s1438_s3  ;;  %162 = vrot.lane.b32.xlu1 %v153_v1, %s1438_s3  ;;  %v154_v2 = vld [vmem:[%s133_s14 + $0x10] sm:$0xff]  ;;  %v155_v3 = vld [vmem:[%s133_s14 + $0x18] sm:$0xff]  ;;  %v174_v5 = vunpack.c.l.s4 %v1439_v4  ;;  %v1440_v9 = vmov 1934713408   ;;  %v1441_v13 = vmov 0.0   ;;  %s1442_s21 = smov 16  }
  0x34   : > { %v177_v8 = vshrl.u32 %v176_v6, 7  ;;  %v205_v10 = vunpack.c.l.s4 %v1440_v9  ;;  %v172_v14 = vcombine.high %v152_v0, %v1441_v13  ;;  %v238_v15 = vcombine.high %v153_v1, %v1441_v13  ;;  %s1443_s15 = smov 64   ;;  %s1444_s19 = smov 80  }
  0x35   : > { %v175_v7 = vunpack.c.0.s8 %v174_v5  ;;  %v304_v20 = vcombine.high %v154_v2, %v1441_v13  ;;  %v370_v21 = vcombine.high %v155_v3, %v1441_v13  ;;  %s1445_s23 = smov 8   ;;  %s1446_s18 = smov 24   ;;  %vm1020_vm0 = vcmask 64512  }
  0x36   : > { %v206_v12 = vunpack.c.0.s8 %v205_v10  ;;  %s1447_s24 = smov 32   ;;  %s1448_s28 = smov 48   ;;  %vm1022_vm1 = vcmask 130048   ;;  %vm1024_vm2 = vcmask 195584   ;;  %vm1026_vm3 = vcmask 261120  }
  0x37   : > { %164 = vrot.lane.b32.xlu0 %v154_v2, %s1438_s3  ;;  %166 = vrot.lane.b32.xlu1 %v155_v3, %s1438_s3  ;;  %v1577_v11 = vsub.s32 %v175_v7, %v177_v8  ;;  %s1449_s29 = smov 72   ;;  %s1450_s20 = smov 88   ;;  %vm1028_vm4 = vcmask 326656   ;;  %vm1030_vm5 = vcmask 392192   ;;  %vm1032_vm6 = vcmask 457728  }
  0x38   : > { %v1582_v17 = vsub.s32 %v206_v12, %v177_v8  ;;  %s1451_s26 = smov 96   ;;  %s1452_s30 = smov 112   ;;  %vm1034_vm7 = vcmask 523264   ;;  %vm1036_vm8 = vcmask 588800   ;;  %vm1038_vm9 = vcmask 654336  }
  0x39   : > { %v179_v16 = vrot.slane %v152_v0, %v1577_v11  ;;  %v186_v18 = vrot.slane %v172_v14, %v1577_v11  ;;  %v245_v19 = vrot.slane %v153_v1, %v1577_v11  ;;  %v252_v28 = vrot.slane %v238_v15, %v1577_v11  ;;  %s1453_s4 = smov 40   ;;  %s1454_s5 = smov 56  }
  0x3a   : > { %v311_v29 = vrot.slane %v154_v2, %v1577_v11  ;;  %v1595_v30 = vrot.slane %v155_v3, %v1577_v11  ;;  %v318_v35 = vrot.slane %v304_v20, %v1577_v11  ;;  %v1601_v36 = vrot.slane %v370_v21, %v1577_v11  ;;  %s1455_s14 = smov 104  }
  0x3b   : > { %vm1040_vm10 = vcmask 719872   ;;  %vm1042_vm11 = vcmask 785408   ;;  %vm1044_vm12 = vcmask 850944   ;;  %vm1046_vm13 = vcmask 916480  }
  0x3c   : > { %vm1048_vm14 = vcmask 982016  }
  0xa5   : > { %v161_v22 = vpop.permute.xlu0 %160  ;;  %v163_v23 = vpop.permute.xlu1 %162 }
  0xa6   : > { %v187_v24 = vcombine.high %v161_v22, %v1441_v13  ;;  %v194_v25 = vrot.slane %v161_v22, %v1577_v11  ;;  %v253_v26 = vcombine.high %v163_v23, %v1441_v13  ;;  %v260_v27 = vrot.slane %v163_v23, %v1577_v11 }
  0xa8   : > { %v201_v31 = vrot.slane %v187_v24, %v1577_v11  ;;  %v202_v32 = vcombine.low %v179_v16, %v194_v25  ;;  %v203_v33 = vcombine.high %v179_v16, %v194_v25  ;;  %v267_v34 = vrot.slane %v253_v26, %v1577_v11 }
  0xa9   : > { %v268_v37 = vcombine.low %v245_v19, %v260_v27  ;;  %v269_v38 = vcombine.high %v245_v19, %v260_v27  ;;  %v165_v55 = vpop.permute.xlu0 %164  ;;  %v167_v0 = vpop.permute.xlu1 %166 }
  0xaa   : > { %v210_v39 = vrot.slane %v202_v32, %v1582_v17  ;;  %v217_v40 = vrot.slane %v203_v33, %v1582_v17  ;;  %v218_v41 = vcombine.low %v186_v18, %v201_v31  ;;  %v219_v42 = vcombine.high %v186_v18, %v201_v31 }
  0xab   : > { %v276_v43 = vrot.slane %v268_v37, %v1582_v17  ;;  %v283_v44 = vrot.slane %v269_v38, %v1582_v17  ;;  %v284_v45 = vcombine.low %v252_v28, %v267_v34  ;;  %v285_v46 = vcombine.high %v252_v28, %v267_v34 }
  0xac   : > { %v226_v47 = vrot.slane %v218_v41, %v1582_v17  ;;  %v233_v48 = vrot.slane %v219_v42, %v1582_v17  ;;  %v436_v49 = vcombine.low %v210_v39, %v217_v40  ;;  %v1190_v50 = vcombine.high %v210_v39, %v217_v40 }
  0xad   : > { %v292_v51 = vrot.slane %v284_v45, %v1582_v17  ;;  %v299_v52 = vrot.slane %v285_v46, %v1582_v17  ;;  %v486_v53 = vcombine.low %v276_v43, %v283_v44  ;;  %v1192_v54 = vcombine.high %v276_v43, %v283_v44 }
  0xae   : > { %v443_v56 = vrot.slane %v436_v49, %v1577_v11  ;;  %v451_v57 = vrot.slane %v1190_v50, %v1577_v11  ;;  %v452_v58 = vcombine.low %v226_v47, %v233_v48  ;;  %v1191_v59 = vcombine.high %v226_v47, %v233_v48 }
  0xaf   : > { %v493_v60 = vrot.slane %v486_v53, %v1577_v11  ;;  %v501_v61 = vrot.slane %v1192_v54, %v1577_v11  ;;  %v502_v62 = vcombine.low %v292_v51, %v299_v52  ;;  %v1193_v63 = vcombine.high %v292_v51, %v299_v52 }
  0xb0   : > { %v459_v1 = vrot.slane %v452_v58, %v1577_v11  ;;  %v467_v2 = vrot.slane %v1191_v59, %v1577_v11  ;;  %v468_v3 = vcombine.low %v443_v56, %v451_v57  ;;  %v319_v4 = vcombine.high %v165_v55, %v1441_v13 }
  0xb1   : > { %v509_v5 = vrot.slane %v502_v62, %v1577_v11  ;;  %v517_v6 = vrot.slane %v1193_v63, %v1577_v11  ;;  %v518_v7 = vcombine.low %v493_v60, %v501_v61  ;;  %v326_v8 = vrot.slane %v165_v55, %v1577_v11 }
  0xb2   : > { %v476_v9 = vcombine.low %v459_v1, %v467_v2  ;;  %v333_v10 = vrot.slane %v319_v4, %v1577_v11  ;;  %v385_v12 = vcombine.high %v167_v0, %v1441_v13  ;;  %v392_v14 = vrot.slane %v167_v0, %v1577_v11 }
  0xb3   : > { %v526_v15 = vcombine.low %v509_v5, %v517_v6  ;;  %v334_v16 = vcombine.low %v311_v29, %v326_v8  ;;  %v335_v18 = vcombine.high %v311_v29, %v326_v8  ;;  %v475_v19 = vrot.slane %v468_v3, %v1582_v17 }
  0xb4   : > { %v350_v20 = vcombine.low %v318_v35, %v333_v10  ;;  %v351_v21 = vcombine.high %v318_v35, %v333_v10  ;;  %v399_v22 = vrot.slane %v385_v12, %v1577_v11  ;;  %v400_v23 = vcombine.low %v1595_v30, %v392_v14 }
  0xb5   : > { %v342_v24 = vrot.slane %v334_v16, %v1582_v17  ;;  %v349_v25 = vrot.slane %v335_v18, %v1582_v17  ;;  %v401_v26 = vcombine.high %v1595_v30, %v392_v14  ;;  %v1631_v27 = vrot.slane %v476_v9, %v1582_v17 }
  0xb6   : > { %v358_v28 = vrot.slane %v350_v20, %v1582_v17  ;;  %v365_v29 = vrot.slane %v351_v21, %v1582_v17  ;;  %v408_v31 = vrot.slane %v400_v23, %v1582_v17  ;;  %v416_v32 = vcombine.low %v1601_v36, %v399_v22 }
  0xb7   : > { %v536_v33 = vcombine.low %v342_v24, %v349_v25  ;;  %v1194_v34 = vcombine.high %v342_v24, %v349_v25  ;;  %v415_v35 = vrot.slane %v401_v26, %v1582_v17  ;;  %v417_v37 = vcombine.high %v1601_v36, %v399_v22 }
  0xb8   : > { %v552_v38 = vcombine.low %v358_v28, %v365_v29  ;;  %v1195_v39 = vcombine.high %v358_v28, %v365_v29  ;;  %v424_v30 = vrot.slane %v416_v32, %v1582_v17  ;;  %v484_v40 = vcombine.low %v475_v19, %v1631_v27 }
  0xb9   : > { %v543_v41 = vrot.slane %v536_v33, %v1577_v11  ;;  %v551_v42 = vrot.slane %v1194_v34, %v1577_v11  ;;  %v431_v43 = vrot.slane %v417_v37, %v1582_v17  ;;  %v586_v44 = vcombine.low %v408_v31, %v415_v35 }
  0xba   : > { %v559_v45 = vrot.slane %v552_v38, %v1577_v11  ;;  %v567_v46 = vrot.slane %v1195_v39, %v1577_v11  ;;  %v1196_v47 = vcombine.high %v408_v31, %v415_v35  ;;  %v485_v36 = vcombine.high %v475_v19, %v1631_v27 }
  0xbb   : > { %v568_v48 = vcombine.low %v543_v41, %v551_v42  ;;  %v593_v49 = vrot.slane %v586_v44, %v1577_v11  ;;  %v602_v50 = vcombine.low %v424_v30, %v431_v43  ;;  %v1197_v51 = vcombine.high %v424_v30, %v431_v43 }
  0xbc   : > { %v576_v52 = vcombine.low %v559_v45, %v567_v46  ;;  %v601_v53 = vrot.slane %v1196_v47, %v1577_v11  ;;  %v643_v54 = vrot.slane %v484_v40, %v1577_v11  ;;  %v658_v55 = vrot.slane %v485_v36, %v1577_v11 }
  0xbd   : > { %v609_v56 = vrot.slane %v602_v50, %v1577_v11  ;;  %v617_v57 = vrot.slane %v1197_v51, %v1577_v11  ;;  %v575_v58 = vrot.slane %v568_v48, %v1582_v17  ;;  %v525_v59 = vrot.slane %v518_v7, %v1582_v17 }
  0xbe   : > { %v618_v60 = vcombine.low %v593_v49, %v601_v53  ;;  %v667_v61 = vcombine.high %v643_v54, %v658_v55  ;;  %v583_v62 = vrot.slane %v576_v52, %v1582_v17  ;;  %v1657_v63 = vrot.slane %v526_v15, %v1582_v17 }
  0xbf   : > { %v626_v0 = vcombine.low %v609_v56, %v617_v57  ;;  %v666_v25 = vcombine.low %v643_v54, %v658_v55  ;;  %v636_v33 = vcombine.high %v484_v40, %v1441_v13  ;;  %v1198_v34 = vcombine.high %v1631_v27, %v1441_v13 }
  0xc0   : > { %v681_v1 = vrot.slane %v667_v61, %v1582_v17  ;;  %v584_v2 = vcombine.low %v575_v58, %v583_v62  ;;  %v585_v3 = vcombine.high %v575_v58, %v583_v62  ;;  %v534_v4 = vcombine.low %v525_v59, %v1657_v63 }
  0xc1   : > { %v535_v5 = vcombine.high %v525_v59, %v1657_v63  ;;  %v625_v6 = vrot.slane %v618_v60, %v1582_v17  ;;  %v1664_v7 = vrot.slane %v626_v0, %v1582_v17  ;;  %v1679_v32 = vrot.slane %v666_v25, %v1582_v17 }
  0xc2   : > { %905 = vrot.lane.b32.xlu0 %v681_v1, %s1442_s21  ;;  %v775_v8 = vrot.slane %v584_v2, %v1577_v11  ;;  %v790_v9 = vrot.slane %v585_v3, %v1577_v11  ;;  %v709_v10 = vrot.slane %v534_v4, %v1577_v11  ;;  %v768_v38 = vcombine.high %v584_v2, %v1441_v13 }
  0xc3   : > { %v724_v12 = vrot.slane %v535_v5, %v1577_v11  ;;  %v634_v14 = vcombine.low %v625_v6, %v1664_v7  ;;  %v635_v15 = vcombine.high %v625_v6, %v1664_v7  ;;  %v698_v39 = vcombine.high %v1679_v32, %v1441_v13 }
  0xc4   : > { %v799_v16 = vcombine.high %v775_v8, %v790_v9  ;;  %v798_v29 = vcombine.low %v775_v8, %v790_v9  ;;  %v650_v30 = vrot.slane %v636_v33, %v1577_v11  ;;  %v1200_v40 = vcombine.high %v583_v62, %v1441_v13 }
  0xc5   : > { %v732_v18 = vcombine.low %v709_v10, %v724_v12  ;;  %v841_v19 = vrot.slane %v634_v14, %v1577_v11  ;;  %v856_v20 = vrot.slane %v635_v15, %v1577_v11  ;;  %v733_v24 = vcombine.high %v709_v10, %v724_v12 }
  0xc6   : > { %v813_v21 = vrot.slane %v799_v16, %v1582_v17  ;;  %v1686_v37 = vrot.slane %v798_v29, %v1582_v17  ;;  %v665_v41 = vrot.slane %v1198_v34, %v1577_v11  ;;  %v782_v42 = vrot.slane %v768_v38, %v1577_v11 }
  0xc7   : > { %v740_v22 = vrot.slane %v732_v18, %v1582_v17  ;;  %v864_v23 = vcombine.low %v841_v19, %v856_v20  ;;  %v865_v28 = vcombine.high %v841_v19, %v856_v20  ;;  %v747_v31 = vrot.slane %v733_v24, %v1582_v17 }
  0xc8   : > { %965 = vrot.lane.b32.xlu1 %v813_v21, %s1442_s21  ;;  %v830_v27 = vcombine.high %v1686_v37, %v1441_v13  ;;  %v699_v43 = vcombine.high %v681_v1, %v1441_v13  ;;  %v682_v44 = vcombine.low %v650_v30, %v665_v41  ;;  %v797_v45 = vrot.slane %v1200_v40, %v1577_v11  ;;  %s1204_s21 = sshll.u32 %s1416_s9, 1 }
  0xc9   : > { %929 = vrot.lane.b32.xlu0 %v740_v22, %s1443_s15  ;;  %v872_v26 = vrot.slane %v864_v23, %v1582_v17  ;;  %v879_v35 = vrot.slane %v865_v28, %v1582_v17  ;;  %v831_v46 = vcombine.high %v813_v21, %v1441_v13  ;;  %v683_v48 = vcombine.high %v650_v30, %v665_v41 }
  0xca   : > { %v814_v47 = vcombine.low %v782_v42, %v797_v45  ;;  %v690_v36 = vrot.slane %v682_v44, %v1582_v17  ;;  %v815_v50 = vcombine.high %v782_v42, %v797_v45  ;;  %v702_v52 = vcombine.high %v534_v4, %v1441_v13 }
  0xcb   : > { %v697_v51 = vrot.slane %v683_v48, %v1582_v17  ;;  %v1199_v53 = vcombine.high %v1657_v63, %v1441_v13  ;;  %v834_v55 = vcombine.high %v634_v14, %v1441_v13  ;;  %v1201_v56 = vcombine.high %v1664_v7, %v1441_v13 }
  0xcc   : > { %989 = vrot.lane.b32.xlu1 %v872_v26, %s1443_s15  ;;  %v822_v49 = vrot.slane %v814_v47, %v1582_v17  ;;  %v829_v54 = vrot.slane %v815_v50, %v1582_v17  ;;  %v764_v57 = vcombine.high %v740_v22, %v1441_v13  ;;  %v716_v58 = vrot.slane %v702_v52, %v1577_v11  ;;  %s1205_s15 = sshll.u32 %s1420_s10, 2 }
  0xcd   : > { %937 = vrot.lane.b32.xlu0 %v747_v31, %s1444_s19  ;;  %v731_v59 = vrot.slane %v1199_v53, %v1577_v11  ;;  %v896_v60 = vcombine.high %v872_v26, %v1441_v13  ;;  %v848_v61 = vrot.slane %v834_v55, %v1577_v11  ;;  %v863_v62 = vrot.slane %v1201_v56, %v1577_v11 }
  0xce   : > { %v765_v63 = vcombine.high %v747_v31, %v1441_v13  ;;  %v897_v1 = vcombine.high %v879_v35, %v1441_v13  ;;  %v700_v8 = vcombine.high %v690_v36, %v1441_v13  ;;  %v832_v9 = vcombine.high %v822_v49, %v1441_v13 }
  0xcf   : > { %v748_v0 = vcombine.low %v716_v58, %v731_v59  ;;  %v880_v2 = vcombine.low %v848_v61, %v863_v62  ;;  %v749_v4 = vcombine.high %v716_v58, %v731_v59  ;;  %v881_v6 = vcombine.high %v848_v61, %v863_v62 }
  0xd0   : > { %997 = vrot.lane.b32.xlu1 %v879_v35, %s1444_s19  ;;  %v701_v10 = vcombine.high %v697_v51, %v1441_v13  ;;  %v833_v12 = vcombine.high %v829_v54, %v1441_v13  ;;  %s1090_s19 = sadd.s32 %s1205_s15, %s1204_s21 }
  0xd1   : > { %901 = vrot.lane.b32.xlu0 %v698_v39, %s1445_s23  ;;  %v756_v3 = vrot.slane %v748_v0, %v1582_v17  ;;  %v888_v5 = vrot.slane %v880_v2, %v1582_v17  ;;  %v763_v11 = vrot.slane %v749_v4, %v1582_v17  ;;  %v895_v7 = vrot.slane %v881_v6, %v1582_v17  ;;  %s1206_s9 = sshll.u32 %s1090_s19, 5 }
  0xd3   : > { %v766_v14 = vcombine.high %v756_v3, %v1441_v13  ;;  %v898_v17 = vcombine.high %v888_v5, %v1441_v13  ;;  %v767_v15 = vcombine.high %v763_v11, %v1441_v13  ;;  %v899_v16 = vcombine.high %v895_v7, %v1441_v13 }
  0xd4   : > { %961 = vrot.lane.b32.xlu1 %v830_v27, %s1445_s23 }
  0xd5   : > { %909 = vrot.lane.b32.xlu0 %v699_v43, %s1446_s18 }
  0xd8   : > { %969 = vrot.lane.b32.xlu1 %v831_v46, %s1446_s18 }
  0xd9   : > { %913 = vrot.lane.b32.xlu0 %v690_v36, %s1447_s24 }
  0xdc   : > { %973 = vrot.lane.b32.xlu1 %v822_v49, %s1447_s24 }
  0xdd   : > { %921 = vrot.lane.b32.xlu0 %v697_v51, %s1448_s28 }
  0xe0   : > { %981 = vrot.lane.b32.xlu1 %v829_v54, %s1448_s28  ;;  %s1092_s28 = scalar_lea.hbm %s1796_s1, %s1206_s9 }
  0xe1   : > { %933 = vrot.lane.b32.xlu0 %v764_v57, %s1449_s29 }
  0xe4   : > { %993 = vrot.lane.b32.xlu1 %v896_v60, %s1449_s29  ;;  %s1078_s29 = scalar_lea.sflag [#allocation4], %s1565_s2 }
  0xe5   : > { %941 = vrot.lane.b32.xlu0 %v765_v63, %s1450_s20 }
  0xe8   : > { %1001 = vrot.lane.b32.xlu1 %v897_v1, %s1450_s20 }
  0xe9   : > { %945 = vrot.lane.b32.xlu0 %v756_v3, %s1451_s26 }
  0xec   : > { %1005 = vrot.lane.b32.xlu1 %v888_v5, %s1451_s26  ;;  %s1456_s26 = smov [#allocation5]  }
  0xed   : > { %953 = vrot.lane.b32.xlu0 %v763_v11, %s1452_s30 }
  0xf0   : > { %1013 = vrot.lane.b32.xlu1 %v895_v7, %s1452_s30  ;;  %s1340_s30 = sshll.u32 %s1456_s26, 4  ;;  %s1341_s30 = int_to_ptr.vmem [resolvable:$false] %s1340_s30 }
  0xf1   : > { %917 = vrot.lane.b32.xlu0 %v700_v8, %s1453_s4 }
  0xf4   : > { %977 = vrot.lane.b32.xlu1 %v832_v9, %s1453_s4  ;;  %s1342_s4 = scalar_lea.vmem %s1341_s30, 128 }
  0xf5   : > { %925 = vrot.lane.b32.xlu0 %v701_v10, %s1454_s5 }
  0xf8   : > { %985 = vrot.lane.b32.xlu1 %v833_v12, %s1454_s5 }
  0xf9   : > { %949 = vrot.lane.b32.xlu0 %v766_v14, %s1455_s14 }
  0xfc   : > { %1009 = vrot.lane.b32.xlu1 %v898_v17, %s1455_s14 }
  0xfd   : > { %957 = vrot.lane.b32.xlu0 %v767_v15, %s1438_s3 }
 0x100   : > { %1017 = vrot.lane.b32.xlu1 %v899_v16, %s1438_s3  ;;  %s1189_s3 = sshll.u32 %s1565_s2, 2 }
 0x101   : > { %s151_s10 = scalar_lea.vmem [#allocation5], %s1189_s3 }
 0x102   : > { %s1094_s23 = sshll.u32 %s151_s10, 4  ;;  %s1095_s23 = int_to_ptr.vmem [resolvable:$true] %s1094_s23 }
 0x103   : > { %s1336_s20 = scalar_lea.vmem %s1095_s23, 64  ;;  %p1343_p4 = scmp.lt.s32.totalorder %s1095_s23, %s1341_s30 }
 0x104   : > { %p1337_p8 = scmp.ne.s32.totalorder %s1095_s23, %s1336_s20  ;;  %p1344_p5 = scmp.lt.s32.totalorder %s1342_s4, %s1336_s20 }
 0x106   : > { %p1338_p0 = pnand %p1337_p8, %p1532_p9  ;;  %p1345_p6 = por %p1344_p5, %p1343_p4 }
 0x108   : > { %p1339_p2 = pneg %p1338_p0 }
 0x10a   : > { %p1346_p7 = pnand %p1345_p6, %p1339_p2 }
 0x134   : > { %v906_v18 = vpop.permute.xlu0 %905 }
 0x13a   : > { %v966_v19 = vpop.permute.xlu1 %965 }
 0x13b   : > { %v930_v20 = vpop.permute.xlu0 %929 }
 0x13e   : > { %v990_v21 = vpop.permute.xlu1 %989 }
 0x13f   : > { %v938_v22 = vpop.permute.xlu0 %937 }
 0x142   : > { %v998_v23 = vpop.permute.xlu1 %997 }
 0x143   : > { %v902_v24 = vpop.permute.xlu0 %901 }
 0x144   : > { %v1021_v40 = vsel %vm1020_vm0, %v1679_v32, %v902_v24 }
 0x145   : > { %v1023_v43 = vsel %vm1022_vm1, %v1021_v40, %v906_v18 }
 0x146   : > { %v962_v25 = vpop.permute.xlu1 %961 }
 0x147   : > { %v910_v26 = vpop.permute.xlu0 %909  ;;  %v1050_v42 = vsel %vm1020_vm0, %v1686_v37, %v962_v25 }
 0x148   : > { %v1025_v44 = vsel %vm1024_vm2, %v1023_v43, %v910_v26  ;;  %v1051_v36 = vsel %vm1022_vm1, %v1050_v42, %v966_v19 }
 0x14a   : > { %v970_v28 = vpop.permute.xlu1 %969 }
 0x14b   : > { %v914_v29 = vpop.permute.xlu0 %913  ;;  %v1052_v49 = vsel %vm1024_vm2, %v1051_v36, %v970_v28 }
 0x14c   : > { %v1027_v46 = vsel %vm1026_vm3, %v1025_v44, %v914_v29 }
 0x14e   : > { %v974_v31 = vpop.permute.xlu1 %973 }
 0x14f   : > { %v922_v33 = vpop.permute.xlu0 %921  ;;  %v1053_v32 = vsel %vm1026_vm3, %v1052_v49, %v974_v31 }
 0x152   : > { %v982_v34 = vpop.permute.xlu1 %981 }
 0x153   : > { %v934_v35 = vpop.permute.xlu0 %933 }
 0x156   : > { %v994_v38 = vpop.permute.xlu1 %993 }
 0x157   : > { %v942_v39 = vpop.permute.xlu0 %941 }
 0x15a   : > { %v1002_v13 = vpop.permute.xlu1 %1001 }
 0x15b   : > { %v946_v30 = vpop.permute.xlu0 %945 }
 0x15e   : > { %v1006_v41 = vpop.permute.xlu1 %1005 }
 0x15f   : > { %v954_v27 = vpop.permute.xlu0 %953 }
 0x162   : > { %v1014_v45 = vpop.permute.xlu1 %1013 }
 0x163   : > { %v918_v47 = vpop.permute.xlu0 %917 }
 0x164   : > { %v1029_v48 = vsel %vm1028_vm4, %v1027_v46, %v918_v47 }
 0x165   : > { %v1031_v52 = vsel %vm1030_vm5, %v1029_v48, %v922_v33 }
 0x166   : > { %v978_v50 = vpop.permute.xlu1 %977 }
 0x167   : > { %v1054_v51 = vsel %vm1028_vm4, %v1053_v32, %v978_v50  ;;  %v926_v37 = vpop.permute.xlu0 %925 }
 0x168   : > { %v1033_v53 = vsel %vm1032_vm6, %v1031_v52, %v926_v37  ;;  %v1055_v56 = vsel %vm1030_vm5, %v1054_v51, %v982_v34 }
 0x169   : > { %v1035_v54 = vsel %vm1034_vm7, %v1033_v53, %v930_v20 }
 0x16a   : > { %v1037_v55 = vsel %vm1036_vm8, %v1035_v54, %v934_v35  ;;  %v986_v57 = vpop.permute.xlu1 %985 }
 0x16b   : > { %v1056_v58 = vsel %vm1032_vm6, %v1055_v56, %v986_v57  ;;  %v1039_v59 = vsel %vm1038_vm9, %v1037_v55, %v938_v22  ;;  %v950_v60 = vpop.permute.xlu0 %949 }
 0x16c   : > { %v1057_v61 = vsel %vm1034_vm7, %v1056_v58, %v990_v21  ;;  %v1041_v62 = vsel %vm1040_vm10, %v1039_v59, %v942_v39 }
 0x16d   : > { %v1058_v63 = vsel %vm1036_vm8, %v1057_v61, %v994_v38  ;;  %v1043_v0 = vsel %vm1042_vm11, %v1041_v62, %v946_v30 }
 0x16e   : > { %v1045_v1 = vsel %vm1044_vm12, %v1043_v0, %v950_v60  ;;  %v1059_v2 = vsel %vm1038_vm9, %v1058_v63, %v998_v23  ;;  %v1010_v3 = vpop.permute.xlu1 %1009 }
 0x16f   : > { %v1060_v4 = vsel %vm1040_vm10, %v1059_v2, %v1002_v13  ;;  %v1047_v6 = vsel %vm1046_vm13, %v1045_v1, %v954_v27  ;;  %v958_v11 = vpop.permute.xlu0 %957 }
 0x170   : > { %v1061_v5 = vsel %vm1042_vm11, %v1060_v4, %v1006_v41  ;;  %v1049_v10 = vsel %vm1048_vm14, %v1047_v6, %v958_v11 }
 0x171   : > { %v1062_v7 = vsel %vm1044_vm12, %v1061_v5, %v1010_v3 }
 0x172   : > { %v1063_v8 = vsel %vm1046_vm13, %v1062_v7, %v1014_v45  ;;  %v1018_v9 = vpop.permute.xlu1 %1017 }
 0x173   : > { %v1064_v12 = vsel %vm1048_vm14, %v1063_v8, %v1018_v9 }
 0x174   : > { %v1067_v14 = vcombine.low %v1049_v10, %v1064_v12 }
 0x176   : > { %1202 = vst.sshfl [vmem:[%s151_s10] sm:$0x33 pattern:$0x76325410] %v1067_v14 }
 0x177   : > { %1349 = shalt.err (!%p1346_p7)
}
 0x178   : > { %s1350_s5 = scalar_lea.hbm %s1092_s28, 64  ;;  %s1354_s3 = scalar_lea.hbm %s1796_s1, 256 }
 0x179   : > { %p1351_p10 = scmp.ne.s32.totalorder %s1092_s28, %s1350_s5  ;;  %p1355_p13 = scmp.lt.s32.totalorder %s1092_s28, %s1796_s1 }
 0x17a   : > { %p1356_p1 = scmp.lt.s32.totalorder %s1354_s3, %s1350_s5 }
 0x17b   : > { %p1352_p11 = pnand %p1351_p10, %p1532_p9 }
 0x17c   : > { %p1357_p8 = por %p1356_p1, %p1355_p13 }
 0x17d   : > { %p1353_p3 = pneg %p1352_p11 }
 0x17f   : > { %p1358_p0 = pnand %p1357_p8, %p1353_p3 }
 0x181   : > { %1361 = shalt.err (!%p1358_p0)
}
 0x182   : > { %1211 = dma.vmem_to_hbm [thread:$0]  (%p1532_p9), %s1095_s23, 64, %s1092_s28, %s1078_s29  }
 0x183 PF: > { %p1222_p2 = scmp.ge.s32.totalorder %s1432_s13, 2  ;;  %s1106_s19 = sand.u32 1, %s1404_s6  }
 0x184   : > { %s1107_s9 = scalar_lea.sflag [#allocation4], %s1106_s19 }
 0x185   : > { %p1218_p4 = pnand %p1222_p2, %p1538_p12 }
 0x187   : > { %p1219_p5 = pneg %p1218_p4 }
 0x189   : > { %1399 = dma.done.wait (%p1219_p5), %s1107_s9, 64  }
 0x18a   : > { %1401 = vsyncadd (%p1219_p5), %s1107_s9, 4294967232  ;;  %s17_s13 = sadd.s32 1, %s1432_s13   ;;  %s1802_s6 = smov %s1408_s7 }
 0x18b   : > { %p14_p6 = scmp.ge.s32.totalorder %s17_s13, 6   ;;  %s1803_s7 = smov %s1412_s8 }
 0x18c   : > { %s1804_s8 = smov %s1545_s27  ;;  %s1805_s9 = smov %s1424_s11 }
 0x18d   : > { %s1806_s10 = smov %s1428_s12  ;;  %s1807_s11 = smov %s1810_s16 }
 0x18e   : > { %s1808_s12 = smov %s1814_s17  ;;  %16 = sbr.rel (!%p14_p6) target bundleno = 7 (0x7), region = 69 }
 0x193   :  { %1112 = vsyncpa [#allocation3], 1 }
 0x194   :  { %1114 = vsyncpa [#allocation3 + $0x1], 1 }
 0x195   :  { %1115 = vsyncpa [#allocation4], 1 }
 0x196   :  { %1117 = vsyncpa [#allocation4 + $0x1], 1 }

</bundles_post_ra>
